<compile_context>
chip_gen: v7x
topology: tpu7x:2x2x1
jax: 0.10.0
libtpu: 0.0.40
codegen_flags: <defaults>
</compile_context>

<pallas_src>
import math

import jax
import jax.numpy as jnp
from jax.experimental import pallas as pl
from jax.experimental.pallas import tpu as pltpu


def _round_up(x, m):
    return ((x + m - 1) // m) * m


def _sublane(itemsize):
    return {1: 32, 2: 16, 4: 8}.get(int(itemsize), 8)


def _vmem_capacity_bytes():
    try:
        return int(pltpu.get_tpu_info().vmem_capacity_bytes)
    except Exception:
        return 64 << 20   # conservative default: v7x per-TensorCore VMEM


# ---------------------------------------------------------------------------
# Kernels
# ---------------------------------------------------------------------------
def _agg_kernel_flat(self_ref, neigh_ref, w_self_ref, w_stack_ref, out_ref):
    # self_ref:  (TB, F)        neigh_ref:  (TB, N*F)
    # w_self_ref:(F, O_pad)     w_stack_ref:(N*F, O_pad)  (= tile(W_neigh/N, (N,1)))
    # out_ref:   (TB, O_pad)
    out = jnp.dot(self_ref[...], w_self_ref[...],
                  preferred_element_type=jnp.float32)
    out = out + jnp.dot(neigh_ref[...], w_stack_ref[...],
                        preferred_element_type=jnp.float32)
    out_ref[...] = out.astype(out_ref.dtype)


def _agg_kernel_3d(self_ref, neigh_ref, w_self_ref, w_neigh_ref, out_ref):
    # self_ref:  (TB, F)        neigh_ref:  (TB, N, F)
    # w_self_ref:(F, O_pad)     w_neigh_ref:(F, O_pad)  (already scaled by 1/N)
    # out_ref:   (TB, O_pad)
    agg = jnp.sum(neigh_ref[...], axis=1, dtype=jnp.float32)      # (TB, F), f32 acc
    if w_neigh_ref.dtype != jnp.float32:
        # keep the MXU contraction single-pass (e.g. bf16 x bf16, f32 accumulate)
        agg = agg.astype(w_neigh_ref.dtype)
    out = jnp.dot(self_ref[...], w_self_ref[...],
                  preferred_element_type=jnp.float32)
    out = out + jnp.dot(agg, w_neigh_ref[...],
                        preferred_element_type=jnp.float32)
    out_ref[...] = out.astype(out_ref.dtype)


# ---------------------------------------------------------------------------
# Wrapper
# ---------------------------------------------------------------------------
def base_aggregator_forward(self_feat, neigh_feat, weight):
    """Pallas implementation of BaseAggregator.forward.

    self_feat:  (*, F)
    neigh_feat: (*, N, F)  or (*, N*F)  (viewed like the PyTorch module)
    weight:     nn.Linear weight, shape (O, 2*F)
    returns:    (*, O)
    """
    feat_dim = self_feat.shape[-1]
    out_dim = weight.shape[0]

    # PyTorch glue: if ranks match, view neigh as (*, -1, F).
    if self_feat.ndim == neigh_feat.ndim:
        neigh_feat = neigh_feat.reshape(self_feat.shape[:-1] + (-1, feat_dim))

    lead_shape = self_feat.shape[:-1]
    b_total = int(math.prod(lead_shape)) if lead_shape else 1
    n_nbr = neigh_feat.shape[-2]

    self_2d = self_feat.reshape(b_total, feat_dim)

    act_dt = self_feat.dtype
    act_itemsize = jnp.dtype(act_dt).itemsize
    w_itemsize = jnp.dtype(weight.dtype).itemsize
    # TODO(synk): result_type may upcast vs. the PyTorch module's output dtype
    # (e.g. bf16 activations x f32 weights -> f32 out); PyTorch requires matching
    # dtypes so this only differs for intentionally-mixed inputs.
    out_dtype = jnp.result_type(act_dt, weight.dtype)
    out_itemsize = jnp.dtype(out_dtype).itemsize
    sub = _sublane(act_itemsize)
    w_sub = _sublane(w_itemsize)

    # Lane-dense output: pad O to a multiple of 128 with zero weight columns so
    # the (TB, O_pad) store is a full-width vst; slice back afterwards.
    o_pad = _round_up(out_dim, 128)

    # Split the transposed Linear weight into self / neighbor halves; fold the
    # 1/N mean scale into the neighbor half (tiny rounding diff for bf16 weights).
    w_t = weight.T                                              # (2F, O)
    w_self = w_t[:feat_dim]                                     # (F, O)
    w_neigh = w_t[feat_dim:] * jnp.asarray(1.0 / float(n_nbr), dtype=weight.dtype)
    if o_pad != out_dim:
        w_self = jnp.pad(w_self, ((0, 0), (0, o_pad - out_dim)))
        w_neigh = jnp.pad(w_neigh, ((0, 0), (0, o_pad - out_dim)))

    # ----- generation-aware VMEM budgets ------------------------------------
    vmem_cap = _vmem_capacity_bytes()
    if vmem_cap >= (100 << 20):      # v5e / v6e: 128 MiB physical VMEM
        act_budget = 56 << 20
        vmem_ceiling = 100 << 20
    else:                            # v7x: 64 MiB per TensorCore
        act_budget = 26 << 20
        vmem_ceiling = 56 << 20

    # ----- path selection ----------------------------------------------------
    # Flattened path: lane-dense (TB, N*F) operand + stacked weight, no XLU sum.
    w_stack_phys = _round_up(n_nbr * feat_dim, w_sub) * o_pad * w_itemsize
    use_flat = (feat_dim % 128 != 0) and (w_stack_phys <= (8 << 20))

    if use_flat:
        neigh_in = neigh_feat.reshape(b_total, n_nbr * feat_dim)
        # TODO(synk): in a real deployment precompute this stacked weight once.
        w_nbr_in = jnp.tile(w_neigh, (n_nbr, 1))                 # (N*F, O_pad)
        kernel = _agg_kernel_flat
        w_nbr_rows = n_nbr * feat_dim
        neigh_phys_row = act_itemsize * _round_up(n_nbr * feat_dim, 128)
    else:
        neigh_in = neigh_feat.reshape(b_total, n_nbr, feat_dim)
        w_nbr_in = w_neigh                                       # (F, O_pad)
        kernel = _agg_kernel_3d
        w_nbr_rows = feat_dim
        neigh_phys_row = act_itemsize * _round_up(n_nbr, sub) * _round_up(feat_dim, 128)

    # ----- padding-aware VMEM accounting & tile size --------------------------
    # Budget weights at the double-buffered worst case (Buffered(1) only frees
    # headroom if accepted).
    weight_phys = 2 * o_pad * w_itemsize * (
        _round_up(feat_dim, w_sub) + _round_up(w_nbr_rows, w_sub))
    self_phys_row = act_itemsize * _round_up(feat_dim, 128)
    out_phys_row = out_itemsize * o_pad
    per_row = 2 * (neigh_phys_row + self_phys_row + out_phys_row)  # double-buffered

    tile_budget = act_budget - weight_phys
    if tile_budget < per_row * sub:
        # TODO(synk): pathological F*O; accept the minimum tile and let the
        # limit clamp below.
        tile_budget = per_row * sub
    tb = max(sub, min(tile_budget // per_row, 2048))
    tb = max(sub, (tb // sub) * sub)
    # Keep >=4 grid steps when the batch allows (2 TCs on v7x + DMA overlap).
    tb = min(tb, max(sub, _round_up(pl.cdiv(b_total, 4), sub)))
    tb = min(tb, _round_up(b_total, sub))
    if b_total <= sub:
        tb = b_total                 # block == full batch dim (valid layout)

    grid = (pl.cdiv(b_total, tb),)

    blocks_bytes = tb * per_row + weight_phys
    vmem_limit = int(max(32 << 20, min(blocks_bytes + (8 << 20), vmem_ceiling)))

    # ----- pallas_call ---------------------------------------------------------
    if use_flat:
        neigh_block = (tb, n_nbr * feat_dim)
        neigh_idx = lambda i: (i, 0)
    else:
        neigh_block = (tb, n_nbr, feat_dim)
        neigh_idx = lambda i: (i, 0, 0)

    def _run(single_buffer_weights):
        if single_buffer_weights:
            w_spec_a = pl.BlockSpec((feat_dim, o_pad), lambda i: (0, 0),
                                    pipeline_mode=pl.Buffered(1))
            w_spec_b = pl.BlockSpec((w_nbr_rows, o_pad), lambda i: (0, 0),
                                    pipeline_mode=pl.Buffered(1))
        else:
            w_spec_a = pl.BlockSpec((feat_dim, o_pad), lambda i: (0, 0))
            w_spec_b = pl.BlockSpec((w_nbr_rows, o_pad), lambda i: (0, 0))
        return pl.pallas_call(
            kernel,
            out_shape=jax.ShapeDtypeStruct((b_total, o_pad), out_dtype),
            grid=grid,
            in_specs=[
                pl.BlockSpec((tb, feat_dim), lambda i: (i, 0)),
                pl.BlockSpec(neigh_block, neigh_idx),
                w_spec_a,            # grid-invariant, VMEM-resident
                w_spec_b,            # grid-invariant, VMEM-resident
            ],
            out_specs=pl.BlockSpec((tb, o_pad), lambda i: (i, 0)),
            compiler_params=pltpu.CompilerParams(
                dimension_semantics=("parallel",),   # no cross-step accumulator
                vmem_limit_bytes=vmem_limit),
        )(self_2d, neigh_in, w_self, w_nbr_in)

    try:
        out = _run(True)
    except Exception:
        # Fallback if single-buffered (Buffered(1)) weight specs are rejected.
        out = _run(False)

    if o_pad != out_dim:
        out = out[:, :out_dim]
    return out.reshape(lead_shape + (out_dim,))


def glorot_uniform_relu(key, out_dim, in_dim, dtype=jnp.float32):
    """xavier_uniform_ with gain = calculate_gain('relu') = sqrt(2)."""
    gain = math.sqrt(2.0)
    bound = gain * math.sqrt(6.0 / (in_dim + out_dim))
    return jax.random.uniform(key, (out_dim, in_dim), dtype=dtype,
                              minval=-bound, maxval=bound)


if __name__ == "__main__":
    # Small shapes: batch=8 nodes, 8 neighbors each, feat_dim=32, output_dim=32.
    B, N, F, O = 8, 8, 32, 32

    key = jax.random.PRNGKey(0)
    k_self, k_neigh, k_w = jax.random.split(key, 3)

    self_feat = jax.random.normal(k_self, (B, F), dtype=jnp.float32)
    neigh_feat = jax.random.normal(k_neigh, (B, N, F), dtype=jnp.float32)

    # nn.Linear(2*F, O, bias=False) weight, Glorot-uniform(gain=relu).
    weight = glorot_uniform_relu(k_w, O, 2 * F)

    out = base_aggregator_forward(self_feat, neigh_feat, weight)
    out = jax.block_until_ready(out)

    # Reference check in plain JAX (same math as the PyTorch module).
    agg_ref = jnp.mean(neigh_feat, axis=1)
    ref = jnp.concatenate([self_feat, agg_ref], axis=-1) @ weight.T
    assert out.shape == (B, O)
    assert jnp.allclose(out, ref, atol=1e-5, rtol=1e-5), \
        float(jnp.max(jnp.abs(out - ref)))

    print("KERNEL_OK")
</pallas_src>

<mosaic_0001>
module attributes {stable_mosaic.version = 11 : i64} {
  func.func @_agg_kernel_flat(%arg0: i32, %arg1: memref<8x32xf32, #tpu.memory_space<vmem>>, %arg2: memref<8x256xf32, #tpu.memory_space<vmem>>, %arg3: memref<32x128xf32, #tpu.memory_space<vmem>>, %arg4: memref<256x128xf32, #tpu.memory_space<vmem>>, %arg5: memref<8x128xf32, #tpu.memory_space<vmem>>) attributes {dimension_semantics = [#tpu.dimension_semantics<parallel>], iteration_bounds = array<i64: 1>, scalar_prefetch = 0 : i64, scratch_operands = 0 : i64, tpu.core_type = #tpu.core_type<tc>, window_params = [{transform_indices = @transform_0, window_bounds = array<i64: 8, 32>}, {transform_indices = @transform_1, window_bounds = array<i64: 8, 256>}, {pipeline_mode = #tpu.pipeline_mode<synchronous>, transform_indices = @transform_2, window_bounds = array<i64: 32, 128>}, {pipeline_mode = #tpu.pipeline_mode<synchronous>, transform_indices = @transform_3, window_bounds = array<i64: 256, 128>}, {transform_indices = @transform_4, window_bounds = array<i64: 8, 128>}]} {
    %c0 = arith.constant 0 : index
    %c0_0 = arith.constant 0 : index
    %0 = vector.load %arg1[%c0, %c0_0] : memref<8x32xf32, #tpu.memory_space<vmem>>, vector<8x32xf32>
    %c0_1 = arith.constant 0 : index
    %c0_2 = arith.constant 0 : index
    %1 = vector.load %arg3[%c0_1, %c0_2] : memref<32x128xf32, #tpu.memory_space<vmem>>, vector<32x128xf32>
    %cst = arith.constant dense<0.000000e+00> : vector<8x128xf32>
    %2 = tpu.matmul %0, %1, %cst {dimension_numbers = #tpu.dot_dimension_numbers<[1], [0], [0], [1], [0, 0, 1, 1], [], []>} : vector<8x32xf32>, vector<32x128xf32>, vector<8x128xf32> -> vector<8x128xf32>
    %c0_3 = arith.constant 0 : index
    %c0_4 = arith.constant 0 : index
    %3 = vector.load %arg2[%c0_3, %c0_4] : memref<8x256xf32, #tpu.memory_space<vmem>>, vector<8x256xf32>
    %c0_5 = arith.constant 0 : index
    %c0_6 = arith.constant 0 : index
    %4 = vector.load %arg4[%c0_5, %c0_6] : memref<256x128xf32, #tpu.memory_space<vmem>>, vector<256x128xf32>
    %cst_7 = arith.constant dense<0.000000e+00> : vector<8x128xf32>
    %5 = tpu.matmul %3, %4, %cst_7 {dimension_numbers = #tpu.dot_dimension_numbers<[1], [0], [0], [1], [0, 0, 1, 1], [], []>} : vector<8x256xf32>, vector<256x128xf32>, vector<8x128xf32> -> vector<8x128xf32>
    %6 = arith.addf %2, %5 : vector<8x128xf32>
    %c0_8 = arith.constant 0 : index
    %c0_9 = arith.constant 0 : index
    %7 = vector.load %arg5[%c0_8, %c0_9] : memref<8x128xf32, #tpu.memory_space<vmem>>, vector<8x128xf32>
    tpu.vector_store %arg5[%c0_8, %c0_9], %6 {strides = array<i32>} : memref<8x128xf32, #tpu.memory_space<vmem>>, vector<8x128xf32>,
    return
  }
  func.func @transform_0(%arg0: i32) -> (i32, i32) {
    %c0_i32 = arith.constant 0 : i32
    %c0_i32_0 = arith.constant 0 : i32
    return %arg0, %c0_i32 : i32, i32
  }
  func.func @transform_1(%arg0: i32) -> (i32, i32) {
    %c0_i32 = arith.constant 0 : i32
    %c0_i32_0 = arith.constant 0 : i32
    return %arg0, %c0_i32 : i32, i32
  }
  func.func @transform_2(%arg0: i32) -> (i32, i32) {
    %c0_i32 = arith.constant 0 : i32
    %c0_i32_0 = arith.constant 0 : i32
    %c0_i32_1 = arith.constant 0 : i32
    return %c0_i32, %c0_i32_0 : i32, i32
  }
  func.func @transform_3(%arg0: i32) -> (i32, i32) {
    %c0_i32 = arith.constant 0 : i32
    %c0_i32_0 = arith.constant 0 : i32
    %c0_i32_1 = arith.constant 0 : i32
    return %c0_i32, %c0_i32_0 : i32, i32
  }
  func.func @transform_4(%arg0: i32) -> (i32, i32) {
    %c0_i32 = arith.constant 0 : i32
    %c0_i32_0 = arith.constant 0 : i32
    return %arg0, %c0_i32 : i32, i32
  }
}

module attributes {stable_mosaic.version = 11 : i64} {
  func.func @_agg_kernel_flat(%arg0: i32, %arg1: memref<8x32xf32, #tpu.memory_space<vmem>>, %arg2: memref<8x256xf32, #tpu.memory_space<vmem>>, %arg3: memref<32x128xf32, #tpu.memory_space<vmem>>, %arg4: memref<256x128xf32, #tpu.memory_space<vmem>>, %arg5: memref<8x128xf32, #tpu.memory_space<vmem>>) attributes {dimension_semantics = [#tpu.dimension_semantics<parallel>], iteration_bounds = array<i64: 1>, scalar_prefetch = 0 : i64, scratch_operands = 0 : i64, tpu.core_type = #tpu.core_type<tc>, window_params = [{transform_indices = @transform_0, window_bounds = array<i64: 8, 32>}, {transform_indices = @transform_1, window_bounds = array<i64: 8, 256>}, {pipeline_mode = #tpu.pipeline_mode<synchronous>, transform_indices = @transform_2, window_bounds = array<i64: 32, 128>}, {pipeline_mode = #tpu.pipeline_mode<synchronous>, transform_indices = @transform_3, window_bounds = array<i64: 256, 128>}, {transform_indices = @transform_4, window_bounds = array<i64: 8, 128>}]} {
    %c0 = arith.constant 0 : index
    %c0_0 = arith.constant 0 : index
    %0 = vector.load %arg1[%c0, %c0_0] : memref<8x32xf32, #tpu.memory_space<vmem>>, vector<8x32xf32>
    %c0_1 = arith.constant 0 : index
    %c0_2 = arith.constant 0 : index
    %1 = vector.load %arg3[%c0_1, %c0_2] : memref<32x128xf32, #tpu.memory_space<vmem>>, vector<32x128xf32>
    %cst = arith.constant dense<0.000000e+00> : vector<8x128xf32>
    %2 = tpu.matmul %0, %1, %cst {dimension_numbers = #tpu.dot_dimension_numbers<[1], [0], [0], [1], [0, 0, 1, 1], [], []>} : vector<8x32xf32>, vector<32x128xf32>, vector<8x128xf32> -> vector<8x128xf32>
    %c0_3 = arith.constant 0 : index
    %c0_4 = arith.constant 0 : index
    %3 = vector.load %arg2[%c0_3, %c0_4] : memref<8x256xf32, #tpu.memory_space<vmem>>, vector<8x256xf32>
    %c0_5 = arith.constant 0 : index
    %c0_6 = arith.constant 0 : index
    %4 = vector.load %arg4[%c0_5, %c0_6] : memref<256x128xf32, #tpu.memory_space<vmem>>, vector<256x128xf32>
    %cst_7 = arith.constant dense<0.000000e+00> : vector<8x128xf32>
    %5 = tpu.matmul %3, %4, %cst_7 {dimension_numbers = #tpu.dot_dimension_numbers<[1], [0], [0], [1], [0, 0, 1, 1], [], []>} : vector<8x256xf32>, vector<256x128xf32>, vector<8x128xf32> -> vector<8x128xf32>
    %6 = arith.addf %2, %5 : vector<8x128xf32>
    %c0_8 = arith.constant 0 : index
    %c0_9 = arith.constant 0 : index
    %7 = vector.load %arg5[%c0_8, %c0_9] : memref<8x128xf32, #tpu.memory_space<vmem>>, vector<8x128xf32>
    tpu.vector_store %arg5[%c0_8, %c0_9], %6 {strides = array<i32>} : memref<8x128xf32, #tpu.memory_space<vmem>>, vector<8x128xf32>,
    return
  }
  func.func @transform_0(%arg0: i32) -> (i32, i32) {
    %c0_i32 = arith.constant 0 : i32
    %c0_i32_0 = arith.constant 0 : i32
    return %arg0, %c0_i32 : i32, i32
  }
  func.func @transform_1(%arg0: i32) -> (i32, i32) {
    %c0_i32 = arith.constant 0 : i32
    %c0_i32_0 = arith.constant 0 : i32
    return %arg0, %c0_i32 : i32, i32
  }
  func.func @transform_2(%arg0: i32) -> (i32, i32) {
    %c0_i32 = arith.constant 0 : i32
    %c0_i32_0 = arith.constant 0 : i32
    %c0_i32_1 = arith.constant 0 : i32
    return %c0_i32, %c0_i32_0 : i32, i32
  }
  func.func @transform_3(%arg0: i32) -> (i32, i32) {
    %c0_i32 = arith.constant 0 : i32
    %c0_i32_0 = arith.constant 0 : i32
    %c0_i32_1 = arith.constant 0 : i32
    return %c0_i32, %c0_i32_0 : i32, i32
  }
  func.func @transform_4(%arg0: i32) -> (i32, i32) {
    %c0_i32 = arith.constant 0 : i32
    %c0_i32_0 = arith.constant 0 : i32
    return %arg0, %c0_i32 : i32, i32
  }
}

</mosaic_0001>

<bundles_post_ra>
// kernel: tpu_custom_call.1
= control target key start
LH: loop header
LB: loop body
LE: loop exit
PB: predicated region body
PF: predicated region fallthrough
CT: control target
= control target key end

     0   :  { %9 = vsyncpa [#allocation3], 0  ;;  %s583_s0 = inlined_call_operand.hbm [shape: f32[8,32], index: 0, kind: input, shape index: {}]   ;;  %s584_s1 = inlined_call_operand.hbm [shape: f32[8,256], index: 1, kind: input, shape index: {}]   ;;  %s585_s2 = inlined_call_operand.hbm [shape: f32[32,128], index: 2, kind: input, shape index: {}]   ;;  %s586_s3 = inlined_call_operand.hbm [shape: f32[256,128], index: 3, kind: input, shape index: {}]   ;;  %s587_s4 = inlined_call_operand.hbm [shape: f32[8,128], index: 4, kind: output, shape index: {}]  }
   0x1   :  { %10 = vsyncpa [#allocation6], 0 }
   0x2   :  { %11 = vsyncpa [#allocation9], 0 }
   0x3   :  { %12 = vsyncpa [#allocation4], 0  ;;  %s488_s15 = smov [#allocation5]   ;;  %s489_s17 = smov [#allocation2]  }
   0x4   :  { %s29_s16 = sshll.u32 %s488_s15, 4  ;;  %s19_s18 = sshll.u32 %s489_s17, 4  ;;  %s30_s16 = int_to_ptr.vmem [resolvable:$true] %s29_s16  ;;  %s20_s18 = int_to_ptr.vmem [resolvable:$true] %s19_s18 }
   0x5   :  { %s370_s21 = scalar_lea.hbm %s584_s1, 256 }
   0x6   :  { %p371_p0 = scmp.ne.s32.totalorder %s584_s1, %s370_s21  ;;  %p374_p1 = scmp.lt.u32.totalorder %s370_s21, %s584_s1 }
   0x8   :  { %p376_p2 = pnand %p374_p1, %p371_p0 }
   0xa   :  { %379 = shalt.err (!%p376_p2)
}
   0xb   :  { %s380_s26 = scalar_lea.vmem %s30_s16, 256  ;;  %p385_p4 = scmp.lt.s32.totalorder %s30_s16, %s30_s16 }
   0xc   :  { %p381_p3 = scmp.ne.s32.totalorder %s30_s16, %s380_s26  ;;  %p386_p5 = scmp.lt.s32.totalorder %s380_s26, %s380_s26 }
   0xe   :  { %p387_p6 = por %p386_p5, %p385_p4 }
  0x10   :  { %p388_p7 = pnand %p387_p6, %p381_p3 }
  0x12   :  { %391 = shalt.err (!%p388_p7)
}
  0x13   :  { %32 = dma.hbm_to_vmem [thread:$0]  %s584_s1, 256, %s30_s16, [#allocation6]  }
  0x14   :  { %s392_s5 = scalar_lea.hbm %s583_s0, 128 }
  0x15   :  { %p393_p8 = scmp.ne.s32.totalorder %s583_s0, %s392_s5  ;;  %p396_p9 = scmp.lt.u32.totalorder %s392_s5, %s583_s0 }
  0x17   :  { %p398_p10 = pnand %p396_p9, %p393_p8 }
  0x19   :  { %401 = shalt.err (!%p398_p10)
}
  0x1a   :  { %s402_s10 = scalar_lea.vmem %s20_s18, 128  ;;  %p407_p12 = scmp.lt.s32.totalorder %s20_s18, %s20_s18 }
  0x1b   :  { %p403_p11 = scmp.ne.s32.totalorder %s20_s18, %s402_s10  ;;  %p408_p13 = scmp.lt.s32.totalorder %s402_s10, %s402_s10 }
  0x1d   :  { %p409_p0 = por %p408_p13, %p407_p12 }
  0x1f   :  { %p410_p1 = pnand %p409_p0, %p403_p11 }
  0x21   :  { %413 = shalt.err (!%p410_p1)
}
  0x22   :  { %22 = dma.hbm_to_vmem [thread:$0]  %s583_s0, 128, %s20_s18, [#allocation3]  }
  0x23   :  { %s490_s12 = smov [#allocation7]   ;;  %s414_s16 = scalar_lea.hbm %s585_s2, 512 }
  0x24   :  { %s38_s13 = sshll.u32 %s490_s12, 4  ;;  %p415_p2 = scmp.ne.s32.totalorder %s585_s2, %s414_s16  ;;  %s39_s13 = int_to_ptr.vmem [resolvable:$true] %s38_s13 }
  0x25   :  { %p418_p3 = scmp.lt.u32.totalorder %s414_s16, %s585_s2 }
  0x27   :  { %p420_p4 = pnand %p418_p3, %p415_p2 }
  0x29   :  { %423 = shalt.err (!%p420_p4)
}
  0x2a   :  { %s424_s22 = scalar_lea.vmem %s39_s13, 512  ;;  %p429_p6 = scmp.lt.s32.totalorder %s39_s13, %s39_s13 }
  0x2b   :  { %p425_p5 = scmp.ne.s32.totalorder %s39_s13, %s424_s22  ;;  %p430_p7 = scmp.lt.s32.totalorder %s424_s22, %s424_s22 }
  0x2d   :  { %p431_p8 = por %p430_p7, %p429_p6 }
  0x2f   :  { %p432_p9 = pnand %p431_p8, %p425_p5 }
  0x31   :  { %435 = shalt.err (!%p432_p9)
}
  0x32   :  { %s491_s0 = smov 128   ;;  %s492_s18 = smov 8  }
  0x33   :  { %44 = dma.hbm_to_vmem [thread:$0]  %s585_s2, 512, %s39_s13, [#allocation6], %s491_s0, %s491_s0, %s492_s18  }
  0x34   :  { %s493_s25 = smov [#allocation8]   ;;  %s436_s29 = scalar_lea.hbm %s586_s3, 4096 }
  0x35   :  { %s50_s26 = sshll.u32 %s493_s25, 4  ;;  %p437_p10 = scmp.ne.s32.totalorder %s586_s3, %s436_s29  ;;  %s51_s26 = int_to_ptr.vmem [resolvable:$true] %s50_s26 }
  0x36   :  { %p440_p11 = scmp.lt.u32.totalorder %s436_s29, %s586_s3 }
  0x38   :  { %p442_p12 = pnand %p440_p11, %p437_p10 }
  0x3a   :  { %445 = shalt.err (!%p442_p12)
}
  0x3b   :  { %s446_s8 = scalar_lea.vmem %s51_s26, 4096  ;;  %p451_p0 = scmp.lt.s32.totalorder %s51_s26, %s51_s26 }
  0x3c   :  { %p447_p13 = scmp.ne.s32.totalorder %s51_s26, %s446_s8  ;;  %p452_p1 = scmp.lt.s32.totalorder %s446_s8, %s446_s8 }
  0x3e   :  { %p453_p2 = por %p452_p1, %p451_p0 }
  0x40   :  { %p454_p3 = pnand %p453_p2, %p447_p13 }
  0x42   :  { %457 = shalt.err (!%p454_p3)
}
  0x43   :  { %56 = dma.hbm_to_vmem [thread:$0]  %s586_s3, 4096, %s51_s26, [#allocation9], %s491_s0, %s491_s0, %s492_s18  }
  0x44   :  { %480 = dma.done.wait [#allocation3], 128  }
  0x45   :  { %481 = vsyncadd [#allocation3], 4294967168 }
  0x46   :  { %482 = dma.done.wait [#allocation6], 768  }
  0x47   :  { %483 = vsyncadd [#allocation6], 4294966528 }
  0x48   :  { %484 = dma.done.wait [#allocation9], 4096  }
  0x49   :  { %485 = vsyncadd [#allocation9], 4294963200  ;;  %v494_v0 = vmov 0.0|0.0   ;;  %vm495_vm0 = vmmov 0   ;;  %v496_v1 = vmov 0.0   ;;  %v92_v2 = vld [vmem:[#allocation8 + $0x80] sm:$0xff] }
  0x4a   :  { %354 = vmatprep.subr.bf16.mxu1 %v494_v0  ;;  %319 = vmatprep.mubr.msk.f32.mxu1 %vm495_vm0, %v496_v1  ;;  %v93_v3 = vld [vmem:[#allocation8 + $0x88] sm:$0xff]  ;;  %v76_v4 = vld [vmem:[#allocation8] sm:$0xff]  ;;  %v94_v7 = vld [vmem:[#allocation8 + $0x90] sm:$0xff]  ;;  %vm178_vm1 = vcmask 261120   ;;  %s497_s3 = smov [#allocation10]  }
  0x4b   :  { %v322_v5 = vpack.c.bf16 %v93_v3, %v92_v2  ;;  %v77_v6 = vld [vmem:[#allocation8 + $0x8] sm:$0xff]  ;;  %v95_v8 = vld [vmem:[#allocation8 + $0x98] sm:$0xff]  ;;  %v78_v11 = vld [vmem:[#allocation8 + $0x10] sm:$0xff]  ;;  %s259_s10 = sshll.u32 %s497_s3, 4  ;;  %s260_s10 = int_to_ptr.vmem [resolvable:$true] %s259_s10 }
  0x4c   :  { %v324_v9 = vpack.c.bf16 %v77_v6, %v76_v4  ;;  %v326_v10 = vpack.c.bf16 %v95_v8, %v94_v7  ;;  %v79_v12 = vld [vmem:[#allocation8 + $0x18] sm:$0xff]  ;;  %v96_v13 = vld [vmem:[#allocation8 + $0xa0] sm:$0xff]  ;;  %v97_v14 = vld [vmem:[#allocation8 + $0xa8] sm:$0xff]  ;;  %s458_s1 = scalar_lea.vmem %s260_s10, 128  ;;  %p463_p5 = scmp.lt.s32.totalorder %s260_s10, %s260_s10 }
  0x4d   :  { %323 = vmatprep.subr.bf16.mxu0 %v322_v5  ;;  %v328_v15 = vpack.c.bf16 %v79_v12, %v78_v11  ;;  %v330_v16 = vpack.c.bf16 %v97_v14, %v96_v13  ;;  %v80_v17 = vld [vmem:[#allocation8 + $0x20] sm:$0xff]  ;;  %v81_v18 = vld [vmem:[#allocation8 + $0x28] sm:$0xff]  ;;  %v98_v19 = vld [vmem:[#allocation8 + $0xb0] sm:$0xff]  ;;  %p459_p4 = scmp.ne.s32.totalorder %s260_s10, %s458_s1  ;;  %p464_p6 = scmp.lt.s32.totalorder %s458_s1, %s458_s1 }
  0x4e   :  { %325 = vmatpush3.bf16.msra.mxu0 %v324_v9  ;;  %v99_v20 = vld [vmem:[#allocation8 + $0xb8] sm:$0xff]  ;;  %v332_v21 = vpack.c.bf16 %v81_v18, %v80_v17  ;;  %v82_v22 = vld [vmem:[#allocation8 + $0x30] sm:$0xff]  ;;  %v70_v25 = vld [vmem:[#allocation7] sm:$0xff] }
  0x4f   :  { %327 = vmatprep.subr.bf16.mxu0 %v326_v10  ;;  %v334_v23 = vpack.c.bf16 %v99_v20, %v98_v19  ;;  %v83_v24 = vld [vmem:[#allocation8 + $0x38] sm:$0xff]  ;;  %v71_v26 = vld [vmem:[#allocation7 + $0x8] sm:$0xff]  ;;  %v100_v27 = vld [vmem:[#allocation8 + $0xc0] sm:$0xff]  ;;  %p465_p7 = por %p464_p6, %p463_p5 }
  0x50   :  { %v101_v28 = vld [vmem:[#allocation8 + $0xc8] sm:$0xff]  ;;  %v355_v29 = vpack.c.bf16 %v71_v26, %v70_v25  ;;  %v75_v30 = vld [vmem:[#allocation5 + $0x8] sm:$0xff]  ;;  %v72_v31 = vld [vmem:[#allocation7 + $0x10] sm:$0xff]  ;;  %v336_v32 = vpack.c.bf16 %v83_v24, %v82_v22 }
  0x51   :  { %v73_v33 = vld [vmem:[#allocation7 + $0x18] sm:$0xff]  ;;  %v338_v34 = vpack.c.bf16 %v101_v28, %v100_v27  ;;  %v84_v35 = vld [vmem:[#allocation8 + $0x40] sm:$0xff]  ;;  %v85_v36 = vld [vmem:[#allocation8 + $0x48] sm:$0xff]  ;;  %172 = vmatprep.mubr.f32.mxu0 %v75_v30  ;;  %p466_p8 = pnand %p465_p7, %p459_p4 }
  0x52   :  { %329 = vmatpush3.bf16.msra.mxu0 %v328_v15  ;;  %356 = vmatpush3.bf16.msra.mxu1 %v355_v29  ;;  %v358_v37 = vpack.c.bf16 %v73_v33, %v72_v31  ;;  %v102_v38 = vld [vmem:[#allocation8 + $0xd0] sm:$0xff]  ;;  %v103_v39 = vld [vmem:[#allocation8 + $0xd8] sm:$0xff]  ;;  %v340_v40 = vpack.c.bf16 %v85_v36, %v84_v35  ;;  %v69_v41 = vld [vmem:[#allocation2] sm:$0xff] }
  0x53   :  { %331 = vmatprep.subr.bf16.mxu0 %v330_v16  ;;  %357 = vmatprep.subr.bf16.mxu1 %v494_v0  ;;  %v342_v42 = vpack.c.bf16 %v103_v39, %v102_v38  ;;  %v86_v43 = vld [vmem:[#allocation8 + $0x50] sm:$0xff]  ;;  %v87_v44 = vld [vmem:[#allocation8 + $0x58] sm:$0xff]  ;;  %v104_v45 = vld [vmem:[#allocation8 + $0xe0] sm:$0xff] }
  0x54   :  { %v105_v46 = vld [vmem:[#allocation8 + $0xe8] sm:$0xff]  ;;  %v344_v47 = vpack.c.bf16 %v87_v44, %v86_v43  ;;  %v88_v49 = vld [vmem:[#allocation8 + $0x60] sm:$0xff]  ;;  %v106_v51 = vld [vmem:[#allocation8 + $0xf0] sm:$0xff] }
  0x55   :  { %v346_v48 = vpack.c.bf16 %v105_v46, %v104_v45  ;;  %v89_v50 = vld [vmem:[#allocation8 + $0x68] sm:$0xff]  ;;  %v107_v52 = vld [vmem:[#allocation8 + $0xf8] sm:$0xff]  ;;  %v90_v55 = vld [vmem:[#allocation8 + $0x70] sm:$0xff] }
  0x56   :  { %333 = vmatpush3.bf16.msra.mxu0 %v332_v21  ;;  %359 = vmatpush3.bf16.msra.mxu1 %v358_v37  ;;  %v348_v53 = vpack.c.bf16 %v89_v50, %v88_v49  ;;  %v350_v54 = vpack.c.bf16 %v107_v52, %v106_v51  ;;  %v91_v56 = vld [vmem:[#allocation8 + $0x78] sm:$0xff]  ;;  %v74_v58 = vld [vmem:[#allocation5] sm:$0xff] }
  0x57   :  { %335 = vmatprep.subr.bf16.mxu0 %v334_v23  ;;  %v352_v57 = vpack.c.bf16 %v91_v56, %v90_v55 }
  0x59   :  { %320 = vmatmul.mubr.msk.f32.vlgmr.msra.gmra.mrb[0].mxu1 %vm178_vm1, %v69_v41 }
  0x5a   :  { %337 = vmatpush3.bf16.msra.mxu0 %v336_v32 }
  0x5b   :  { %339 = vmatprep.subr.bf16.mxu0 %v338_v34 }
  0x5e   :  { %341 = vmatpush3.bf16.msra.mxu0 %v340_v40 }
  0x5f   :  { %343 = vmatprep.subr.bf16.mxu0 %v342_v42 }
  0x62   :  { %345 = vmatpush3.bf16.msra.mxu0 %v344_v47 }
  0x63   :  { %347 = vmatprep.subr.bf16.mxu0 %v346_v48 }
  0x66   :  { %349 = vmatpush3.bf16.msra.mxu0 %v348_v53 }
  0x67   :  { %351 = vmatprep.subr.bf16.mxu0 %v350_v54 }
  0x6a   :  { %353 = vmatpush3.bf16.msra.mxu0 %v352_v57 }
  0x6d   :  { %173 = vmatmul.mubr.f32.vlgmr.msra.gmra.mrb[0].mxu0 %v74_v58 }
 0x12c   :  { %v248_v59 = vpop.f32.mrb[0].mxu1 }
 0x12d   :  { %v321_v60 = vpop.f32.mrb[1].mxu1 }
 0x140   :  { %v303_v61 = vpop.f32.mrb[0].mxu0 }
 0x141   :  { %v304_v62 = vpop.f32.mrb[1].mxu0 }
 0x142   :  { %v305_v63 = vadd.f32 %v304_v62, %v303_v61 }
 0x144   :  { %v249_v0 = vadd.f32 %v305_v63, %v248_v59 }
 0x146   :  { %252 = vst [vmem:[#allocation10] sm:$0xff] %v249_v0 }
 0x147   :  { %469 = shalt.err (!%p466_p8)
}
 0x148   :  { %s470_s13 = scalar_lea.hbm %s587_s4, 128 }
 0x149   :  { %p471_p9 = scmp.ne.s32.totalorder %s587_s4, %s470_s13  ;;  %p474_p10 = scmp.lt.u32.totalorder %s470_s13, %s587_s4 }
 0x14b   :  { %p476_p11 = pnand %p474_p10, %p471_p9 }
 0x14d   :  { %479 = shalt.err (!%p476_p11)
}
 0x14e   :  { %262 = dma.vmem_to_hbm [thread:$0]  %s260_s10, 128, %s587_s4, [#allocation4]  }
 0x14f   :  { %486 = dma.done.wait [#allocation4], 128  }
 0x150   :  { %487 = vsyncadd [#allocation4], 4294967168 }
 0x151   :  { %266 = vsyncpa [#allocation3], 1 }
 0x152   :  { %267 = vsyncpa [#allocation6], 1 }
 0x153   :  { %268 = vsyncpa [#allocation9], 1 }
 0x154   :  { %269 = vsyncpa [#allocation4], 1 }

// kernel: tpu_custom_call.1
= control target key start
LH: loop header
LB: loop body
LE: loop exit
PB: predicated region body
PF: predicated region fallthrough
CT: control target
= control target key end

     0   :  { %9 = vsyncpa [#allocation3], 0  ;;  %s583_s0 = inlined_call_operand.hbm [shape: f32[8,32], index: 0, kind: input, shape index: {}]   ;;  %s584_s1 = inlined_call_operand.hbm [shape: f32[8,256], index: 1, kind: input, shape index: {}]   ;;  %s585_s2 = inlined_call_operand.hbm [shape: f32[32,128], index: 2, kind: input, shape index: {}]   ;;  %s586_s3 = inlined_call_operand.hbm [shape: f32[256,128], index: 3, kind: input, shape index: {}]   ;;  %s587_s4 = inlined_call_operand.hbm [shape: f32[8,128], index: 4, kind: output, shape index: {}]  }
   0x1   :  { %10 = vsyncpa [#allocation6], 0 }
   0x2   :  { %11 = vsyncpa [#allocation9], 0 }
   0x3   :  { %12 = vsyncpa [#allocation4], 0  ;;  %s488_s15 = smov [#allocation5]   ;;  %s489_s17 = smov [#allocation2]  }
   0x4   :  { %s29_s16 = sshll.u32 %s488_s15, 4  ;;  %s19_s18 = sshll.u32 %s489_s17, 4  ;;  %s30_s16 = int_to_ptr.vmem [resolvable:$true] %s29_s16  ;;  %s20_s18 = int_to_ptr.vmem [resolvable:$true] %s19_s18 }
   0x5   :  { %s370_s21 = scalar_lea.hbm %s584_s1, 256 }
   0x6   :  { %p371_p0 = scmp.ne.s32.totalorder %s584_s1, %s370_s21  ;;  %p374_p1 = scmp.lt.u32.totalorder %s370_s21, %s584_s1 }
   0x8   :  { %p376_p2 = pnand %p374_p1, %p371_p0 }
   0xa   :  { %379 = shalt.err (!%p376_p2)
}
   0xb   :  { %s380_s26 = scalar_lea.vmem %s30_s16, 256  ;;  %p385_p4 = scmp.lt.s32.totalorder %s30_s16, %s30_s16 }
   0xc   :  { %p381_p3 = scmp.ne.s32.totalorder %s30_s16, %s380_s26  ;;  %p386_p5 = scmp.lt.s32.totalorder %s380_s26, %s380_s26 }
   0xe   :  { %p387_p6 = por %p386_p5, %p385_p4 }
  0x10   :  { %p388_p7 = pnand %p387_p6, %p381_p3 }
  0x12   :  { %391 = shalt.err (!%p388_p7)
}
  0x13   :  { %32 = dma.hbm_to_vmem [thread:$0]  %s584_s1, 256, %s30_s16, [#allocation6]  }
  0x14   :  { %s392_s5 = scalar_lea.hbm %s583_s0, 128 }
  0x15   :  { %p393_p8 = scmp.ne.s32.totalorder %s583_s0, %s392_s5  ;;  %p396_p9 = scmp.lt.u32.totalorder %s392_s5, %s583_s0 }
  0x17   :  { %p398_p10 = pnand %p396_p9, %p393_p8 }
  0x19   :  { %401 = shalt.err (!%p398_p10)
}
  0x1a   :  { %s402_s10 = scalar_lea.vmem %s20_s18, 128  ;;  %p407_p12 = scmp.lt.s32.totalorder %s20_s18, %s20_s18 }
  0x1b   :  { %p403_p11 = scmp.ne.s32.totalorder %s20_s18, %s402_s10  ;;  %p408_p13 = scmp.lt.s32.totalorder %s402_s10, %s402_s10 }
  0x1d   :  { %p409_p0 = por %p408_p13, %p407_p12 }
  0x1f   :  { %p410_p1 = pnand %p409_p0, %p403_p11 }
  0x21   :  { %413 = shalt.err (!%p410_p1)
}
  0x22   :  { %22 = dma.hbm_to_vmem [thread:$0]  %s583_s0, 128, %s20_s18, [#allocation3]  }
  0x23   :  { %s490_s12 = smov [#allocation7]   ;;  %s414_s16 = scalar_lea.hbm %s585_s2, 512 }
  0x24   :  { %s38_s13 = sshll.u32 %s490_s12, 4  ;;  %p415_p2 = scmp.ne.s32.totalorder %s585_s2, %s414_s16  ;;  %s39_s13 = int_to_ptr.vmem [resolvable:$true] %s38_s13 }
  0x25   :  { %p418_p3 = scmp.lt.u32.totalorder %s414_s16, %s585_s2 }
  0x27   :  { %p420_p4 = pnand %p418_p3, %p415_p2 }
  0x29   :  { %423 = shalt.err (!%p420_p4)
}
  0x2a   :  { %s424_s22 = scalar_lea.vmem %s39_s13, 512  ;;  %p429_p6 = scmp.lt.s32.totalorder %s39_s13, %s39_s13 }
  0x2b   :  { %p425_p5 = scmp.ne.s32.totalorder %s39_s13, %s424_s22  ;;  %p430_p7 = scmp.lt.s32.totalorder %s424_s22, %s424_s22 }
  0x2d   :  { %p431_p8 = por %p430_p7, %p429_p6 }
  0x2f   :  { %p432_p9 = pnand %p431_p8, %p425_p5 }
  0x31   :  { %435 = shalt.err (!%p432_p9)
}
  0x32   :  { %s491_s0 = smov 128   ;;  %s492_s18 = smov 8  }
  0x33   :  { %44 = dma.hbm_to_vmem [thread:$0]  %s585_s2, 512, %s39_s13, [#allocation6], %s491_s0, %s491_s0, %s492_s18  }
  0x34   :  { %s493_s25 = smov [#allocation8]   ;;  %s436_s29 = scalar_lea.hbm %s586_s3, 4096 }
  0x35   :  { %s50_s26 = sshll.u32 %s493_s25, 4  ;;  %p437_p10 = scmp.ne.s32.totalorder %s586_s3, %s436_s29  ;;  %s51_s26 = int_to_ptr.vmem [resolvable:$true] %s50_s26 }
  0x36   :  { %p440_p11 = scmp.lt.u32.totalorder %s436_s29, %s586_s3 }
  0x38   :  { %p442_p12 = pnand %p440_p11, %p437_p10 }
  0x3a   :  { %445 = shalt.err (!%p442_p12)
}
  0x3b   :  { %s446_s8 = scalar_lea.vmem %s51_s26, 4096  ;;  %p451_p0 = scmp.lt.s32.totalorder %s51_s26, %s51_s26 }
  0x3c   :  { %p447_p13 = scmp.ne.s32.totalorder %s51_s26, %s446_s8  ;;  %p452_p1 = scmp.lt.s32.totalorder %s446_s8, %s446_s8 }
  0x3e   :  { %p453_p2 = por %p452_p1, %p451_p0 }
  0x40   :  { %p454_p3 = pnand %p453_p2, %p447_p13 }
  0x42   :  { %457 = shalt.err (!%p454_p3)
}
  0x43   :  { %56 = dma.hbm_to_vmem [thread:$0]  %s586_s3, 4096, %s51_s26, [#allocation9], %s491_s0, %s491_s0, %s492_s18  }
  0x44   :  { %480 = dma.done.wait [#allocation3], 128  }
  0x45   :  { %481 = vsyncadd [#allocation3], 4294967168 }
  0x46   :  { %482 = dma.done.wait [#allocation6], 768  }
  0x47   :  { %483 = vsyncadd [#allocation6], 4294966528 }
  0x48   :  { %484 = dma.done.wait [#allocation9], 4096  }
  0x49   :  { %485 = vsyncadd [#allocation9], 4294963200  ;;  %v494_v0 = vmov 0.0|0.0   ;;  %vm495_vm0 = vmmov 0   ;;  %v496_v1 = vmov 0.0   ;;  %v92_v2 = vld [vmem:[#allocation8 + $0x80] sm:$0xff] }
  0x4a   :  { %354 = vmatprep.subr.bf16.mxu1 %v494_v0  ;;  %319 = vmatprep.mubr.msk.f32.mxu1 %vm495_vm0, %v496_v1  ;;  %v93_v3 = vld [vmem:[#allocation8 + $0x88] sm:$0xff]  ;;  %v76_v4 = vld [vmem:[#allocation8] sm:$0xff]  ;;  %v94_v7 = vld [vmem:[#allocation8 + $0x90] sm:$0xff]  ;;  %vm178_vm1 = vcmask 261120   ;;  %s497_s3 = smov [#allocation10]  }
  0x4b   :  { %v322_v5 = vpack.c.bf16 %v93_v3, %v92_v2  ;;  %v77_v6 = vld [vmem:[#allocation8 + $0x8] sm:$0xff]  ;;  %v95_v8 = vld [vmem:[#allocation8 + $0x98] sm:$0xff]  ;;  %v78_v11 = vld [vmem:[#allocation8 + $0x10] sm:$0xff]  ;;  %s259_s10 = sshll.u32 %s497_s3, 4  ;;  %s260_s10 = int_to_ptr.vmem [resolvable:$true] %s259_s10 }
  0x4c   :  { %v324_v9 = vpack.c.bf16 %v77_v6, %v76_v4  ;;  %v326_v10 = vpack.c.bf16 %v95_v8, %v94_v7  ;;  %v79_v12 = vld [vmem:[#allocation8 + $0x18] sm:$0xff]  ;;  %v96_v13 = vld [vmem:[#allocation8 + $0xa0] sm:$0xff]  ;;  %v97_v14 = vld [vmem:[#allocation8 + $0xa8] sm:$0xff]  ;;  %s458_s1 = scalar_lea.vmem %s260_s10, 128  ;;  %p463_p5 = scmp.lt.s32.totalorder %s260_s10, %s260_s10 }
  0x4d   :  { %323 = vmatprep.subr.bf16.mxu0 %v322_v5  ;;  %v328_v15 = vpack.c.bf16 %v79_v12, %v78_v11  ;;  %v330_v16 = vpack.c.bf16 %v97_v14, %v96_v13  ;;  %v80_v17 = vld [vmem:[#allocation8 + $0x20] sm:$0xff]  ;;  %v81_v18 = vld [vmem:[#allocation8 + $0x28] sm:$0xff]  ;;  %v98_v19 = vld [vmem:[#allocation8 + $0xb0] sm:$0xff]  ;;  %p459_p4 = scmp.ne.s32.totalorder %s260_s10, %s458_s1  ;;  %p464_p6 = scmp.lt.s32.totalorder %s458_s1, %s458_s1 }
  0x4e   :  { %325 = vmatpush3.bf16.msra.mxu0 %v324_v9  ;;  %v99_v20 = vld [vmem:[#allocation8 + $0xb8] sm:$0xff]  ;;  %v332_v21 = vpack.c.bf16 %v81_v18, %v80_v17  ;;  %v82_v22 = vld [vmem:[#allocation8 + $0x30] sm:$0xff]  ;;  %v70_v25 = vld [vmem:[#allocation7] sm:$0xff] }
  0x4f   :  { %327 = vmatprep.subr.bf16.mxu0 %v326_v10  ;;  %v334_v23 = vpack.c.bf16 %v99_v20, %v98_v19  ;;  %v83_v24 = vld [vmem:[#allocation8 + $0x38] sm:$0xff]  ;;  %v71_v26 = vld [vmem:[#allocation7 + $0x8] sm:$0xff]  ;;  %v100_v27 = vld [vmem:[#allocation8 + $0xc0] sm:$0xff]  ;;  %p465_p7 = por %p464_p6, %p463_p5 }
  0x50   :  { %v101_v28 = vld [vmem:[#allocation8 + $0xc8] sm:$0xff]  ;;  %v355_v29 = vpack.c.bf16 %v71_v26, %v70_v25  ;;  %v75_v30 = vld [vmem:[#allocation5 + $0x8] sm:$0xff]  ;;  %v72_v31 = vld [vmem:[#allocation7 + $0x10] sm:$0xff]  ;;  %v336_v32 = vpack.c.bf16 %v83_v24, %v82_v22 }
  0x51   :  { %v73_v33 = vld [vmem:[#allocation7 + $0x18] sm:$0xff]  ;;  %v338_v34 = vpack.c.bf16 %v101_v28, %v100_v27  ;;  %v84_v35 = vld [vmem:[#allocation8 + $0x40] sm:$0xff]  ;;  %v85_v36 = vld [vmem:[#allocation8 + $0x48] sm:$0xff]  ;;  %172 = vmatprep.mubr.f32.mxu0 %v75_v30  ;;  %p466_p8 = pnand %p465_p7, %p459_p4 }
  0x52   :  { %329 = vmatpush3.bf16.msra.mxu0 %v328_v15  ;;  %356 = vmatpush3.bf16.msra.mxu1 %v355_v29  ;;  %v358_v37 = vpack.c.bf16 %v73_v33, %v72_v31  ;;  %v102_v38 = vld [vmem:[#allocation8 + $0xd0] sm:$0xff]  ;;  %v103_v39 = vld [vmem:[#allocation8 + $0xd8] sm:$0xff]  ;;  %v340_v40 = vpack.c.bf16 %v85_v36, %v84_v35  ;;  %v69_v41 = vld [vmem:[#allocation2] sm:$0xff] }
  0x53   :  { %331 = vmatprep.subr.bf16.mxu0 %v330_v16  ;;  %357 = vmatprep.subr.bf16.mxu1 %v494_v0  ;;  %v342_v42 = vpack.c.bf16 %v103_v39, %v102_v38  ;;  %v86_v43 = vld [vmem:[#allocation8 + $0x50] sm:$0xff]  ;;  %v87_v44 = vld [vmem:[#allocation8 + $0x58] sm:$0xff]  ;;  %v104_v45 = vld [vmem:[#allocation8 + $0xe0] sm:$0xff] }
  0x54   :  { %v105_v46 = vld [vmem:[#allocation8 + $0xe8] sm:$0xff]  ;;  %v344_v47 = vpack.c.bf16 %v87_v44, %v86_v43  ;;  %v88_v49 = vld [vmem:[#allocation8 + $0x60] sm:$0xff]  ;;  %v106_v51 = vld [vmem:[#allocation8 + $0xf0] sm:$0xff] }
  0x55   :  { %v346_v48 = vpack.c.bf16 %v105_v46, %v104_v45  ;;  %v89_v50 = vld [vmem:[#allocation8 + $0x68] sm:$0xff]  ;;  %v107_v52 = vld [vmem:[#allocation8 + $0xf8] sm:$0xff]  ;;  %v90_v55 = vld [vmem:[#allocation8 + $0x70] sm:$0xff] }
  0x56   :  { %333 = vmatpush3.bf16.msra.mxu0 %v332_v21  ;;  %359 = vmatpush3.bf16.msra.mxu1 %v358_v37  ;;  %v348_v53 = vpack.c.bf16 %v89_v50, %v88_v49  ;;  %v350_v54 = vpack.c.bf16 %v107_v52, %v106_v51  ;;  %v91_v56 = vld [vmem:[#allocation8 + $0x78] sm:$0xff]  ;;  %v74_v58 = vld [vmem:[#allocation5] sm:$0xff] }
  0x57   :  { %335 = vmatprep.subr.bf16.mxu0 %v334_v23  ;;  %v352_v57 = vpack.c.bf16 %v91_v56, %v90_v55 }
  0x59   :  { %320 = vmatmul.mubr.msk.f32.vlgmr.msra.gmra.mrb[0].mxu1 %vm178_vm1, %v69_v41 }
  0x5a   :  { %337 = vmatpush3.bf16.msra.mxu0 %v336_v32 }
  0x5b   :  { %339 = vmatprep.subr.bf16.mxu0 %v338_v34 }
  0x5e   :  { %341 = vmatpush3.bf16.msra.mxu0 %v340_v40 }
  0x5f   :  { %343 = vmatprep.subr.bf16.mxu0 %v342_v42 }
  0x62   :  { %345 = vmatpush3.bf16.msra.mxu0 %v344_v47 }
  0x63   :  { %347 = vmatprep.subr.bf16.mxu0 %v346_v48 }
  0x66   :  { %349 = vmatpush3.bf16.msra.mxu0 %v348_v53 }
  0x67   :  { %351 = vmatprep.subr.bf16.mxu0 %v350_v54 }
  0x6a   :  { %353 = vmatpush3.bf16.msra.mxu0 %v352_v57 }
  0x6d   :  { %173 = vmatmul.mubr.f32.vlgmr.msra.gmra.mrb[0].mxu0 %v74_v58 }
 0x12c   :  { %v248_v59 = vpop.f32.mrb[0].mxu1 }
 0x12d   :  { %v321_v60 = vpop.f32.mrb[1].mxu1 }
 0x140   :  { %v303_v61 = vpop.f32.mrb[0].mxu0 }
 0x141   :  { %v304_v62 = vpop.f32.mrb[1].mxu0 }
 0x142   :  { %v305_v63 = vadd.f32 %v304_v62, %v303_v61 }
 0x144   :  { %v249_v0 = vadd.f32 %v305_v63, %v248_v59 }
 0x146   :  { %252 = vst [vmem:[#allocation10] sm:$0xff] %v249_v0 }
 0x147   :  { %469 = shalt.err (!%p466_p8)
}
 0x148   :  { %s470_s13 = scalar_lea.hbm %s587_s4, 128 }
 0x149   :  { %p471_p9 = scmp.ne.s32.totalorder %s587_s4, %s470_s13  ;;  %p474_p10 = scmp.lt.u32.totalorder %s470_s13, %s587_s4 }
 0x14b   :  { %p476_p11 = pnand %p474_p10, %p471_p9 }
 0x14d   :  { %479 = shalt.err (!%p476_p11)
}
 0x14e   :  { %262 = dma.vmem_to_hbm [thread:$0]  %s260_s10, 128, %s587_s4, [#allocation4]  }
 0x14f   :  { %486 = dma.done.wait [#allocation4], 128  }
 0x150   :  { %487 = vsyncadd [#allocation4], 4294967168 }
 0x151   :  { %266 = vsyncpa [#allocation3], 1 }
 0x152   :  { %267 = vsyncpa [#allocation6], 1 }
 0x153   :  { %268 = vsyncpa [#allocation9], 1 }
 0x154   :  { %269 = vsyncpa [#allocation4], 1 }

</bundles_post_ra>
